<compile_context>
chip_gen: v5e
topology: v5e:2x2
jax: 0.10.0
libtpu: 0.0.40
codegen_flags: <defaults>
</compile_context>

<pallas_src>
from functools import partial

import jax
import jax.numpy as jnp
from jax.experimental import pallas as pl
from jax.experimental.pallas import tpu as pltpu


# ---------------------------------------------------------------------------
# Pass 1: block-diagonal conv matmul, per-channel sum / sum-of-squares only.
# ---------------------------------------------------------------------------
def _stats_kernel(w_ref, a_ref, s1_ref, s2_ref, s1_acc, s2_acc):
    # w_ref : [PCout, PCtr]   bf16  block-diagonal per-phase weights
    # a_ref : [PCtr, TR]      bf16  fused im2col columns (row tile)
    # s1/s2_ref : [1,PCout,1] f32   per-core partials (written on last tile)
    # s1/s2_acc : [PCout,128] f32   lane-wide accumulators (VPU adds only)
    r = pl.program_id(1)

    @pl.when(r == 0)
    def _():
        s1_acc[...] = jnp.zeros_like(s1_acc)
        s2_acc[...] = jnp.zeros_like(s2_acc)

    y = jnp.dot(w_ref[...], a_ref[...], preferred_element_type=jnp.float32)
    n_chunks = y.shape[1] // 128
    for j in range(n_chunks):            # static, lane-aligned slices -> VPU adds
        c = y[:, j * 128:(j + 1) * 128]
        s1_acc[...] += c
        s2_acc[...] += c * c

    @pl.when(r == pl.num_programs(1) - 1)
    def _():
        # single cross-lane (XLU) reduction per core, at the very end
        s1_ref[0] = jnp.sum(s1_acc[...], axis=1, keepdims=True)
        s2_ref[0] = jnp.sum(s2_acc[...], axis=1, keepdims=True)


# ---------------------------------------------------------------------------
# Pass 2: recompute the matmul (MXU is idle at these sizes) and fuse the
#         BatchNorm affine + LeakyReLU.  No conv intermediate round-trips HBM.
# ---------------------------------------------------------------------------
def _conv_bn_lrelu_kernel(w_ref, a_ref, sc_ref, sh_ref, o_ref, *,
                          neg_slope, activate_relu):
    y = jnp.dot(w_ref[...], a_ref[...], preferred_element_type=jnp.float32)
    y = y * sc_ref[...] + sh_ref[...]                 # per-channel scale/shift
    if activate_relu:
        y = jnp.where(y >= 0.0, y, neg_slope * y)     # LeakyReLU(0.1)
    o_ref[...] = y.astype(o_ref.dtype)


# ---------------------------------------------------------------------------
# Wrapper
# ---------------------------------------------------------------------------
def transpose_cnn_block(x_nchw, weight, gamma, beta, *, stride=2, padding=0,
                        output_padding=0, activate_relu=True, eps=1e-5,
                        neg_slope=0.1):
    """x_nchw: [N, Cin, H, W]; weight: [Cin, Cout, K, K] (ConvTranspose2d layout)."""
    N, Cin, H, W = x_nchw.shape
    Cin_w, Cout, K, K2 = weight.shape
    assert Cin == Cin_w and K == K2
    s, p, op = int(stride), int(padding), int(output_padding)

    Ho = (H - 1) * s - 2 * p + K + op
    Wo = (W - 1) * s - 2 * p + K + op
    # TODO(synk): generalize phase decomposition to K % s != 0 / ragged phases.
    assert K % s == 0, "this kernel assumes kernel_size % stride == 0"
    assert Ho % s == 0 and Wo % s == 0, "this kernel assumes output size % stride == 0"

    OHp, OWp = Ho // s, Wo // s          # output sub-grid per phase
    P = s * s                            # number of phases
    T = (K // s) ** 2                    # taps per phase
    Ctr = T * Cin                        # contraction size per phase
    R = N * OHp * OWp                    # output rows per phase
    PCout, PCtr = P * Cout, P * Ctr

    # ----- static per-phase metadata, ordered by output offset (oh0, ow0) so
    #       the final interleave is one reshape/transpose ---------------------
    meta = []
    for oh0 in range(s):
        for ow0 in range(s):
            rh = (oh0 + p) % s
            rw = (ow0 + p) % s
            qh0 = (oh0 + p - rh) // s
            qw0 = (ow0 + p - rw) // s
            khs = list(range(rh, K, s))
            kws = list(range(rw, K, s))
            meta.append((oh0, ow0, qh0, qw0, khs, kws))

    pad_h_lo = max(max(0, len(m[4]) - 1 - m[2]) for m in meta)
    pad_h_hi = max(max(0, m[2] + OHp - H) for m in meta)
    pad_w_lo = max(max(0, len(m[5]) - 1 - m[3]) for m in meta)
    pad_w_hi = max(max(0, m[3] + OWp - W) for m in meta)

    # ----- layout plumbing: NCHW -> NHWC, zero-pad, per-phase im2col ---------
    # TODO(synk): move the im2col gather into the kernel (haloed x row-tiles via
    # manual DMA) to drop the T-fold duplicated A buffer from HBM entirely.
    x = jnp.transpose(x_nchw, (0, 2, 3, 1)).astype(jnp.float32)       # [N,H,W,Cin]
    x_pad = jnp.pad(x, ((0, 0), (pad_h_lo, pad_h_hi), (pad_w_lo, pad_w_hi), (0, 0)))

    a_phases, w_phases = [], []
    for (oh0, ow0, qh0, qw0, khs, kws) in meta:
        wins, wcols = [], []
        for mh, kh in enumerate(khs):
            for mw, kw in enumerate(kws):
                ih0 = qh0 - mh + pad_h_lo
                iw0 = qw0 - mw + pad_w_lo
                wins.append(x_pad[:, ih0:ih0 + OHp, iw0:iw0 + OWp, :])  # [N,OHp,OWp,Cin]
                wcols.append(weight[:, :, kh, kw].T)                    # [Cout,Cin]
        a_p = jnp.concatenate(wins, axis=-1)                            # [N,OHp,OWp,Ctr]
        a_phases.append(jnp.moveaxis(a_p, -1, 0).reshape(Ctr, R))       # [Ctr, R]
        w_phases.append(jnp.concatenate(wcols, axis=-1))                # [Cout, Ctr]

    # Block-diagonal fused weights: [PCout, PCtr].
    W_bd = jnp.zeros((PCout, PCtr), jnp.float32)
    for i, w_p in enumerate(w_phases):
        W_bd = W_bd.at[i * Cout:(i + 1) * Cout, i * Ctr:(i + 1) * Ctr].set(w_p)
    W_bd = W_bd.astype(jnp.bfloat16)

    # ----- generation-aware row tiling ---------------------------------------
    NC = 2                                  # leading 'parallel' axis (v7x: 2 TCs)
    try:
        vmem_cap = int(pltpu.get_tpu_info().vmem_capacity_bytes)
    except Exception:
        vmem_cap = 64 * 1024 * 1024         # v7x-safe fallback
    budget = vmem_cap // 4                  # double-buffered working-set target
    bytes_per_row = PCtr * 2 + PCout * 4    # A column (bf16) + output column (f32)
    tr = min(2048, budget // (2 * bytes_per_row), pl.cdiv(R, NC))
    TR = max(128, (tr // 128) * 128)        # lane-aligned row tile
    RT = pl.cdiv(R, TR)
    RT = pl.cdiv(RT, NC) * NC               # pad tile count to a multiple of NC
    R_pad = RT * TR
    RT_pc = RT // NC
    vmem_limit = max(32 * 1024 * 1024, min(vmem_cap // 2, 96 * 1024 * 1024))

    # Fused block-diagonal im2col operand [PCtr, R_pad] (bf16).  Zero-padded
    # tail columns give y == 0, so they add nothing to the batch statistics;
    # their (meaningless) normalized values are sliced away at the end.
    A_bd = jnp.concatenate(a_phases, axis=0)                            # [PCtr, R]
    A_bd = jnp.pad(A_bd, ((0, 0), (0, R_pad - R))).astype(jnp.bfloat16)

    # ----- pass 1: per-channel sum / sum-of-squares only ---------------------
    stat_shape = jax.ShapeDtypeStruct((NC, PCout, 1), jnp.float32)
    flops_mm = 2 * PCout * PCtr * R_pad
    s1, s2 = pl.pallas_call(
        _stats_kernel,
        grid=(NC, RT_pc),
        in_specs=[pl.BlockSpec((PCout, PCtr), lambda c, r: (0, 0)),
                  pl.BlockSpec((PCtr, TR), lambda c, r: (0, c * RT_pc + r))],
        out_specs=[pl.BlockSpec((1, PCout, 1), lambda c, r: (c, 0, 0)),
                   pl.BlockSpec((1, PCout, 1), lambda c, r: (c, 0, 0))],
        out_shape=(stat_shape, stat_shape),
        scratch_shapes=[pltpu.VMEM((PCout, 128), jnp.float32),
                        pltpu.VMEM((PCout, 128), jnp.float32)],
        compiler_params=pltpu.CompilerParams(
            dimension_semantics=("parallel", "arbitrary"),
            vmem_limit_bytes=vmem_limit),
        cost_estimate=pl.CostEstimate(
            flops=flops_mm, transcendentals=0,
            bytes_accessed=PCtr * R_pad * 2 + PCout * PCtr * 2 + 2 * NC * PCout * 4),
    )(W_bd, A_bd)

    # ----- tiny per-channel BN math, hoisted out of the kernels --------------
    # NOTE: one-pass variance (sumsq - mean^2) in f32; adequate at these sizes.
    count = float(P * R)                      # == N * Ho * Wo per channel
    s1_tot = jnp.sum(s1[:, :, 0], axis=0).reshape(P, Cout).sum(axis=0)
    s2_tot = jnp.sum(s2[:, :, 0], axis=0).reshape(P, Cout).sum(axis=0)
    mean = s1_tot / count
    var = jnp.maximum(s2_tot / count - mean * mean, 0.0)   # biased variance
    scale = gamma.astype(jnp.float32) * jax.lax.rsqrt(var + eps)
    shift = beta.astype(jnp.float32) - mean * scale
    scale_bd = jnp.tile(scale, P).reshape(PCout, 1)
    shift_bd = jnp.tile(shift, P).reshape(PCout, 1)

    # ----- pass 2: recompute conv + fused BN affine + LeakyReLU --------------
    bn_kernel = partial(_conv_bn_lrelu_kernel, neg_slope=float(neg_slope),
                        activate_relu=bool(activate_relu))
    out_bd = pl.pallas_call(
        bn_kernel,
        grid=(RT,),
        in_specs=[pl.BlockSpec((PCout, PCtr), lambda r: (0, 0)),
                  pl.BlockSpec((PCtr, TR), lambda r: (0, r)),
                  pl.BlockSpec((PCout, 1), lambda r: (0, 0)),
                  pl.BlockSpec((PCout, 1), lambda r: (0, 0))],
        out_specs=pl.BlockSpec((PCout, TR), lambda r: (0, r)),
        out_shape=jax.ShapeDtypeStruct((PCout, R_pad), jnp.float32),
        compiler_params=pltpu.CompilerParams(
            dimension_semantics=("parallel",),
            vmem_limit_bytes=vmem_limit),
        cost_estimate=pl.CostEstimate(
            flops=flops_mm + 3 * PCout * R_pad, transcendentals=0,
            bytes_accessed=PCtr * R_pad * 2 + PCout * PCtr * 2 + PCout * R_pad * 4),
    )(W_bd, A_bd, scale_bd, shift_bd)

    # ----- single-transpose phase interleave back to NCHW --------------------
    y = out_bd[:, :R].reshape(s, s, Cout, N, OHp, OWp)   # [oh0, ow0, c, n, ohp, owp]
    y = jnp.transpose(y, (3, 2, 4, 0, 5, 1))             # [n, c, ohp, oh0, owp, ow0]
    return y.reshape(N, Cout, Ho, Wo)


# ---------------------------------------------------------------------------
# Pure-JAX reference (matches PyTorch ConvTranspose2d + BatchNorm2d(train) + LeakyReLU)
# ---------------------------------------------------------------------------
def _reference(x_nchw, weight, gamma, beta, *, stride, padding, output_padding,
               activate_relu, eps, neg_slope):
    K = weight.shape[-1]
    rhs = jnp.transpose(weight, (1, 0, 2, 3))[:, :, ::-1, ::-1]     # OIHW, flipped
    conv = jax.lax.conv_general_dilated(
        x_nchw, rhs, window_strides=(1, 1),
        padding=[(K - 1 - padding, K - 1 - padding + output_padding)] * 2,
        lhs_dilation=(stride, stride), rhs_dilation=(1, 1),
        dimension_numbers=("NCHW", "OIHW", "NCHW"),
        precision=jax.lax.Precision.HIGHEST)
    mean = conv.mean(axis=(0, 2, 3), keepdims=True)
    var = ((conv - mean) ** 2).mean(axis=(0, 2, 3), keepdims=True)
    y = (conv - mean) / jnp.sqrt(var + eps)
    y = y * gamma.reshape(1, -1, 1, 1) + beta.reshape(1, -1, 1, 1)
    if activate_relu:
        y = jnp.where(y >= 0, y, neg_slope * y)
    return y


if __name__ == "__main__":
    # Shapes consistent with the module: in_channels=4, out_channels=8,
    # kernel_size=4, stride=2, padding=1.
    N, Cin, H, W = 2, 4, 16, 16
    Cout, K, stride, padding, output_padding = 8, 4, 2, 1, 0

    key = jax.random.PRNGKey(0)
    kx, kw = jax.random.split(key)
    x = jax.random.normal(kx, (N, Cin, H, W), dtype=jnp.float32)
    # ConvTranspose2d weight layout: (in_channels, out_channels, kH, kW)
    weight = 0.1 * jax.random.normal(kw, (Cin, Cout, K, K), dtype=jnp.float32)
    # BatchNorm2d default init: gamma = 1, beta = 0
    gamma = jnp.ones((Cout,), dtype=jnp.float32)
    beta = jnp.zeros((Cout,), dtype=jnp.float32)

    out = transpose_cnn_block(x, weight, gamma, beta, stride=stride,
                              padding=padding, output_padding=output_padding,
                              activate_relu=True)
    out = jax.block_until_ready(out)

    ref = _reference(x, weight, gamma, beta, stride=stride, padding=padding,
                     output_padding=output_padding, activate_relu=True,
                     eps=1e-5, neg_slope=0.1)

    Ho = (H - 1) * stride - 2 * padding + K + output_padding
    Wo = (W - 1) * stride - 2 * padding + K + output_padding
    assert out.shape == (N, Cout, Ho, Wo)
    assert jnp.allclose(out, ref, atol=5e-2, rtol=5e-2), "mismatch vs reference"

    print("KERNEL_OK")
</pallas_src>

<mosaic_0001>
module attributes {stable_mosaic.version = 11 : i64} {
  func.func @_stats_kernel(%arg0: i32, %arg1: i32, %arg2: memref<32x64xbf16, #tpu.memory_space<vmem>>, %arg3: memref<64x256xbf16, #tpu.memory_space<vmem>>, %arg4: memref<1x32x1xf32, #tpu.memory_space<vmem>>, %arg5: memref<1x32x1xf32, #tpu.memory_space<vmem>>, %arg6: memref<32x128xf32, #tpu.memory_space<vmem>>, %arg7: memref<32x128xf32, #tpu.memory_space<vmem>>) attributes {dimension_semantics = [#tpu.dimension_semantics<parallel>, #tpu.dimension_semantics<arbitrary>], iteration_bounds = array<i64: 2, 1>, scalar_prefetch = 0 : i64, scratch_operands = 2 : i64, tpu.core_type = #tpu.core_type<tc>, window_params = [{pipeline_mode = #tpu.pipeline_mode<synchronous>, transform_indices = @transform_0, window_bounds = array<i64: 32, 64>}, {transform_indices = @transform_1, window_bounds = array<i64: 64, 256>}, {transform_indices = @transform_2, window_bounds = array<i64: 1, 32, 1>}, {transform_indices = @transform_3, window_bounds = array<i64: 1, 32, 1>}]} {
    %c0_i32 = arith.constant 0 : i32
    %0 = arith.cmpi eq, %arg1, %c0_i32 : i32
    %1 = arith.extui %0 : i1 to i32
    %c0_i32_0 = arith.constant 0 : i32
    %2 = arith.cmpi ne, %1, %c0_i32_0 : i32
    scf.if %2 {
      %cst_22 = arith.constant 0.000000e+00 : f32
      %25 = vector.broadcast %cst_22 : f32 to vector<32x128xf32>
      %c0_23 = arith.constant 0 : index
      %c0_24 = arith.constant 0 : index
      %26 = vector.load %arg6[%c0_23, %c0_24] : memref<32x128xf32, #tpu.memory_space<vmem>>, vector<32x128xf32>
      tpu.vector_store %arg6[%c0_23, %c0_24], %25 {strides = array<i32>} : memref<32x128xf32, #tpu.memory_space<vmem>>, vector<32x128xf32>,
      %cst_25 = arith.constant 0.000000e+00 : f32
      %27 = vector.broadcast %cst_25 : f32 to vector<32x128xf32>
      %c0_26 = arith.constant 0 : index
      %c0_27 = arith.constant 0 : index
      %28 = vector.load %arg7[%c0_26, %c0_27] : memref<32x128xf32, #tpu.memory_space<vmem>>, vector<32x128xf32>
      tpu.vector_store %arg7[%c0_26, %c0_27], %27 {strides = array<i32>} : memref<32x128xf32, #tpu.memory_space<vmem>>, vector<32x128xf32>,
    } else {
    }
    %c0 = arith.constant 0 : index
    %c0_1 = arith.constant 0 : index
    %3 = vector.load %arg2[%c0, %c0_1] : memref<32x64xbf16, #tpu.memory_space<vmem>>, vector<32x64xbf16>
    %c0_2 = arith.constant 0 : index
    %c0_3 = arith.constant 0 : index
    %4 = vector.load %arg3[%c0_2, %c0_3] : memref<64x256xbf16, #tpu.memory_space<vmem>>, vector<64x256xbf16>
    %cst = arith.constant dense<0.000000e+00> : vector<32x256xf32>
    %5 = tpu.matmul %3, %4, %cst {dimension_numbers = #tpu.dot_dimension_numbers<[1], [0], [0], [1], [0, 0, 1, 1], [], []>} : vector<32x64xbf16>, vector<64x256xbf16>, vector<32x256xf32> -> vector<32x256xf32>
    %6 = vector.extract_strided_slice %5 {offsets = [0, 0], sizes = [32, 128], strides = [1, 1]} : vector<32x256xf32> to vector<32x128xf32>
    %c0_4 = arith.constant 0 : index
    %c0_5 = arith.constant 0 : index
    %7 = vector.load %arg6[%c0_4, %c0_5] : memref<32x128xf32, #tpu.memory_space<vmem>>, vector<32x128xf32>
    %8 = arith.addf %7, %6 : vector<32x128xf32>
    %c0_6 = arith.constant 0 : index
    %c0_7 = arith.constant 0 : index
    %9 = vector.load %arg6[%c0_6, %c0_7] : memref<32x128xf32, #tpu.memory_space<vmem>>, vector<32x128xf32>
    tpu.vector_store %arg6[%c0_6, %c0_7], %8 {strides = array<i32>} : memref<32x128xf32, #tpu.memory_space<vmem>>, vector<32x128xf32>,
    %c0_8 = arith.constant 0 : index
    %c0_9 = arith.constant 0 : index
    %10 = vector.load %arg7[%c0_8, %c0_9] : memref<32x128xf32, #tpu.memory_space<vmem>>, vector<32x128xf32>
    %11 = arith.mulf %6, %6 : vector<32x128xf32>
    %12 = arith.addf %10, %11 : vector<32x128xf32>
    %c0_10 = arith.constant 0 : index
    %c0_11 = arith.constant 0 : index
    %13 = vector.load %arg7[%c0_10, %c0_11] : memref<32x128xf32, #tpu.memory_space<vmem>>, vector<32x128xf32>
    tpu.vector_store %arg7[%c0_10, %c0_11], %12 {strides = array<i32>} : memref<32x128xf32, #tpu.memory_space<vmem>>, vector<32x128xf32>,
    %14 = vector.extract_strided_slice %5 {offsets = [0, 128], sizes = [32, 128], strides = [1, 1]} : vector<32x256xf32> to vector<32x128xf32>
    %c0_12 = arith.constant 0 : index
    %c0_13 = arith.constant 0 : index
    %15 = vector.load %arg6[%c0_12, %c0_13] : memref<32x128xf32, #tpu.memory_space<vmem>>, vector<32x128xf32>
    %16 = arith.addf %15, %14 : vector<32x128xf32>
    %c0_14 = arith.constant 0 : index
    %c0_15 = arith.constant 0 : index
    %17 = vector.load %arg6[%c0_14, %c0_15] : memref<32x128xf32, #tpu.memory_space<vmem>>, vector<32x128xf32>
    tpu.vector_store %arg6[%c0_14, %c0_15], %16 {strides = array<i32>} : memref<32x128xf32, #tpu.memory_space<vmem>>, vector<32x128xf32>,
    %c0_16 = arith.constant 0 : index
    %c0_17 = arith.constant 0 : index
    %18 = vector.load %arg7[%c0_16, %c0_17] : memref<32x128xf32, #tpu.memory_space<vmem>>, vector<32x128xf32>
    %19 = arith.mulf %14, %14 : vector<32x128xf32>
    %20 = arith.addf %18, %19 : vector<32x128xf32>
    %c0_18 = arith.constant 0 : index
    %c0_19 = arith.constant 0 : index
    %21 = vector.load %arg7[%c0_18, %c0_19] : memref<32x128xf32, #tpu.memory_space<vmem>>, vector<32x128xf32>
    tpu.vector_store %arg7[%c0_18, %c0_19], %20 {strides = array<i32>} : memref<32x128xf32, #tpu.memory_space<vmem>>, vector<32x128xf32>,
    %c0_i32_20 = arith.constant 0 : i32
    %22 = arith.cmpi eq, %arg1, %c0_i32_20 : i32
    %23 = arith.extui %22 : i1 to i32
    %c0_i32_21 = arith.constant 0 : i32
    %24 = arith.cmpi ne, %23, %c0_i32_21 : i32
    scf.if %24 {
      %c0_22 = arith.constant 0 : index
      %c0_23 = arith.constant 0 : index
      %25 = vector.load %arg6[%c0_22, %c0_23] : memref<32x128xf32, #tpu.memory_space<vmem>>, vector<32x128xf32>
      %cst_24 = arith.constant dense<0.000000e+00> : vector<32xf32>
      %26 = vector.multi_reduction <add>, %25, %cst_24 [1] : vector<32x128xf32> to vector<32xf32>
      %27 = vector.shape_cast %26 : vector<32xf32> to vector<32x1xf32>
      %c0_25 = arith.constant 0 : index
      %c0_26 = arith.constant 0 : index
      %c0_27 = arith.constant 0 : index
      %28 = vector.load %arg4[%c0_25, %c0_26, %c0_27] : memref<1x32x1xf32, #tpu.memory_space<vmem>>, vector<1x32x1xf32>
      %29 = vector.shape_cast %28 : vector<1x32x1xf32> to vector<32x1xf32>
      %30 = vector.shape_cast %27 : vector<32x1xf32> to vector<1x32x1xf32>
      tpu.vector_store %arg4[%c0_25, %c0_26, %c0_27], %30 {strides = array<i32>} : memref<1x32x1xf32, #tpu.memory_space<vmem>>, vector<1x32x1xf32>,
      %c0_28 = arith.constant 0 : index
      %c0_29 = arith.constant 0 : index
      %31 = vector.load %arg7[%c0_28, %c0_29] : memref<32x128xf32, #tpu.memory_space<vmem>>, vector<32x128xf32>
      %cst_30 = arith.constant dense<0.000000e+00> : vector<32xf32>
      %32 = vector.multi_reduction <add>, %31, %cst_30 [1] : vector<32x128xf32> to vector<32xf32>
      %33 = vector.shape_cast %32 : vector<32xf32> to vector<32x1xf32>
      %c0_31 = arith.constant 0 : index
      %c0_32 = arith.constant 0 : index
      %c0_33 = arith.constant 0 : index
      %34 = vector.load %arg5[%c0_31, %c0_32, %c0_33] : memref<1x32x1xf32, #tpu.memory_space<vmem>>, vector<1x32x1xf32>
      %35 = vector.shape_cast %34 : vector<1x32x1xf32> to vector<32x1xf32>
      %36 = vector.shape_cast %33 : vector<32x1xf32> to vector<1x32x1xf32>
      tpu.vector_store %arg5[%c0_31, %c0_32, %c0_33], %36 {strides = array<i32>} : memref<1x32x1xf32, #tpu.memory_space<vmem>>, vector<1x32x1xf32>,
    } else {
    }
    return
  }
  func.func @transform_0(%arg0: i32, %arg1: i32) -> (i32, i32) {
    %c0_i32 = arith.constant 0 : i32
    %c0_i32_0 = arith.constant 0 : i32
    %c0_i32_1 = arith.constant 0 : i32
    return %c0_i32, %c0_i32_0 : i32, i32
  }
  func.func @transform_1(%arg0: i32, %arg1: i32) -> (i32, i32) {
    %c1_i32 = arith.constant 1 : i32
    %0 = arith.muli %arg0, %c1_i32 : i32
    %1 = arith.addi %0, %arg1 : i32
    %c0_i32 = arith.constant 0 : i32
    %c0_i32_0 = arith.constant 0 : i32
    return %c0_i32, %1 : i32, i32
  }
  func.func @transform_2(%arg0: i32, %arg1: i32) -> (i32, i32, i32) {
    %c0_i32 = arith.constant 0 : i32
    %c0_i32_0 = arith.constant 0 : i32
    %c0_i32_1 = arith.constant 0 : i32
    return %arg0, %c0_i32, %c0_i32_0 : i32, i32, i32
  }
  func.func @transform_3(%arg0: i32, %arg1: i32) -> (i32, i32, i32) {
    %c0_i32 = arith.constant 0 : i32
    %c0_i32_0 = arith.constant 0 : i32
    %c0_i32_1 = arith.constant 0 : i32
    return %arg0, %c0_i32, %c0_i32_0 : i32, i32, i32
  }
}

</mosaic_0001>

<bundles_post_ra>
// kernel: tpu_custom_call.1
= control target key start
LH: loop header
LB: loop body
LE: loop exit
PB: predicated region body
PF: predicated region fallthrough
CT: control target
= control target key end

     0   :  { %9 = vsyncpa [#allocation5], 0  ;;  %s1010_s0 = inlined_call_operand.hbm [shape: bf16[32,64], index: 0, kind: input, shape index: {}]   ;;  %s1011_s1 = inlined_call_operand.hbm [shape: bf16[64,512], index: 1, kind: input, shape index: {}]   ;;  %s1012_s2 = inlined_call_operand.vmem [shape: f32[2,32,1], index: 2, kind: output, shape index: {0}]   ;;  %s1013_s3 = inlined_call_operand.vmem [shape: f32[2,32,1], index: 3, kind: output, shape index: {1}]  }
   0x1   :  { %10 = vsyncpa [#allocation7], 0 }
   0x2   :  { %12 = vsyncpa [#allocation7 + $0x1], 0  ;;  %s868_s12 = smov 0   ;;  %s870_s13 = smov 0  }
   0x3   :  { %s872_s14 = smov 0   ;;  %s874_s15 = smov 0  }
   0x4   :  { %s876_s16 = smov 0   ;;  %s878_s17 = smov 0  }
   0x5 LB: > { %s573_s18 = sadd.s32 4294967295, %s840_s17   ;;  %p73_p0 = scmp.ne.s32.totalorder %s824_s13, %s820_s12  ;;  %s840_s17 = sphi %s878_s17, %s18_s17   ;;  %s836_s16 = sphi %s876_s16, %s1022_s16   ;;  %s832_s15 = sphi %s874_s15, %s1021_s15   ;;  %s828_s14 = sphi %s872_s14, %s1020_s14   ;;  %s824_s13 = sphi %s870_s13, %s1019_s13   ;;  %s820_s12 = sphi %s868_s12, %s1018_s12  }
   0x6   : > { %p898_p1 = scmp.eq.s32.totalorder %s573_s18, 0  ;;  %p575_p2 = scmp.ge.s32.totalorder %s840_s17, 1 }
   0x7   : > { %p136_p3 = scmp.lt.s32.totalorder %s840_s17, 3  ;;  %s147_s23 = sshll.u32 %s1010_s0, 4  ;;  %s148_s23 = int_to_ptr.hbm [resolvable:$true] %s147_s23 }
   0x8   : > { %p906_p4 = por %p898_p1, %p73_p0  ;;  %s842_s25 = smov [#allocation4]  }
   0x9   : > { %p913_p5 = pnand %p575_p2, %p136_p3  ;;  %s149_s26 = sshll.u32 %s842_s25, 4  ;;  %s150_s26 = int_to_ptr.vmem [resolvable:$true] %s149_s26 }
   0xa   : > { %s843_s27 = smov 64   ;;  %s844_s28 = smov 4  }
   0xb   : > { %p661_p6 = pneg %p913_p5  ;;  %s30_s29 = sadd.s32 1, %s836_s16 }
   0xc   : > { %p32_p8 = scmp.ge.s32.totalorder %s30_s29, 2  ;;  %s60_s30 = sadd.s32 1, %s828_s14 }
   0xd   : > { %p662_p7 = pnand %p661_p6, %p898_p1  ;;  %p67_p9 = scmp.ne.s32.totalorder %s828_s14, %s824_s13 }
   0xe   : > { %p68_p10 = scmp.eq.s32.totalorder %s840_s17, 0  ;;  %s1024_s29 = smov (%p32_p8, %s30_s29), 0 }
   0xf   : > { %664 = dma.hbm_to_vmem [thread:$0]  (!%p662_p7), %s148_s23, 256, %s150_s26, [#allocation5], %s843_s27, %s843_s27, %s844_s28  }
  0x10   : > { %p928_p11 = por %p68_p10, %p67_p9  ;;  %p670_p12 = scmp.lt.s32.totalorder %s840_s17, 2 }
  0x11   : > { %s57_s5 = ssub.s32 %s836_s16, %s1024_s29  ;;  %s163_s6 = sand.u32 1, %s828_s14  }
  0x12   : > { %p58_p13 = scmp.eq.s32.totalorder %s57_s5, 0  ;;  %s578_s7 = sshll.u32 %s163_s6, 6 }
  0x13   : > { %s634_s8 = sshll.u32 %s836_s16, 3  ;;  %s167_s21 = scalar_lea.vmem [#allocation6], %s578_s7 }
  0x14   : > { %s938_s9 = scalar_select %p58_p13, %s828_s14, %s60_s30  }
  0x15   : > { %s173_s12 = scalar_lea.hbm %s1011_s1, %s634_s8  ;;  %s176_s22 = sshll.u32 %s167_s21, 4  ;;  %s177_s22 = int_to_ptr.vmem [resolvable:$true] %s176_s22 }
  0x16   : > { %s174_s18 = sshll.u32 %s173_s12, 4  ;;  %p666_p0 = pnand %p670_p12, %p928_p11  ;;  %s175_s18 = int_to_ptr.hbm [resolvable:$true] %s174_s18 }
  0x17   : > { %s164_s23 = scalar_lea.sflag [#allocation7], %s163_s6  ;;  %s845_s25 = smov 256  }
  0x18   : > { %s846_s26 = smov 128   ;;  %s847_s27 = smov 8  }
  0x19   : > { %668 = dma.hbm_to_vmem [thread:$0]  (!%p666_p0), %s175_s18, 1024, %s177_s22, %s164_s23, %s845_s25, %s846_s26, %s847_s27  }
  0x1a   : > { %188 = sbr.rel (%p913_p5) target bundleno = 322 (0x142), region = 28 }
  0x1f   : > { %811 = dma.done.wait (%p898_p1), [#allocation5], 256  }
  0x20   : > { %813 = vsyncadd (%p898_p1), [#allocation5], 4294967040  ;;  %s195_s28 = sand.u32 1, %s824_s13  }
  0x21   : > { %s583_s30 = sshll.u32 %s195_s28, 6  ;;  %s196_s4 = scalar_lea.sflag [#allocation7], %s195_s28 }
  0x22   : > { %s954_s5 = scalar_lea.vmem [#allocation6], %s583_s30 }
  0x23   : > { %815 = dma.done.wait (%p906_p4), %s196_s4, 1024  }
  0x24   : > { %817 = vsyncadd (%p906_p4), %s196_s4, 4294966272  ;;  %v622_v0 = vld [vmem:[%s954_s5 + $0x30] sm:$0xf]  ;;  %v646_v1 = vld [vmem:[%s954_s5 + $0x34] sm:$0xf0]  ;;  %vm315_vm0 = vcmask 523264  }
  0x25   : > { %v645_v2 = vld [vmem:[%s954_s5 + $0x34] sm:$0xf]  ;;  %v623_v3 = vor.u32 %v646_v1, %v622_v0  ;;  %v624_v4 = vld [vmem:[%s954_s5 + $0x38] sm:$0xf0]  ;;  %v614_v5 = vld [vmem:[%s954_s5 + $0x20] sm:$0xf] }
  0x26   : > { %v644_v6 = vld [vmem:[%s954_s5 + $0x24] sm:$0xf0]  ;;  %v627_v7 = vor.u32 %v645_v2, %v624_v4  ;;  %v643_v8 = vld [vmem:[%s954_s5 + $0x24] sm:$0xf]  ;;  %v616_v9 = vld [vmem:[%s954_s5 + $0x28] sm:$0xf0] }
  0x27   : > { %326 = vmatpush.bf16.msra.mxu0 %v623_v3  ;;  %647 = vmatpush.bf16.msra.mxu2 %v623_v3  ;;  %v615_v10 = vor.u32 %v644_v6, %v614_v5  ;;  %v619_v11 = vor.u32 %v643_v8, %v616_v9  ;;  %v606_v12 = vld [vmem:[%s954_s5 + $0x10] sm:$0xf]  ;;  %v642_v13 = vld [vmem:[%s954_s5 + $0x14] sm:$0xf0]  ;;  %v641_v14 = vld [vmem:[%s954_s5 + $0x14] sm:$0xf] }
  0x28   : > { %345 = vmatpush.bf16.msra.mxu1 %v627_v7  ;;  %651 = vmatpush.bf16.msra.mxu3 %v627_v7  ;;  %v608_v15 = vld [vmem:[%s954_s5 + $0x18] sm:$0xf0]  ;;  %v607_v16 = vor.u32 %v642_v13, %v606_v12  ;;  %v598_v18 = vld [vmem:[%s954_s5] sm:$0xf]  ;;  %v640_v19 = vld [vmem:[%s954_s5 + $0x4] sm:$0xf0] }
  0x29   : > { %v611_v17 = vor.u32 %v641_v14, %v608_v15  ;;  %v639_v20 = vld [vmem:[%s954_s5 + $0x4] sm:$0xf]  ;;  %v600_v21 = vld [vmem:[%s954_s5 + $0x8] sm:$0xf0]  ;;  %v599_v22 = vor.u32 %v640_v19, %v598_v18  ;;  %v637_v24 = vld [vmem:[#allocation4] sm:$0xff]  ;;  %p230_p1 = scmp.lt.s32.totalorder %s832_s15, 1 }
  0x2a   : > { %v603_v23 = vor.u32 %v639_v20, %v600_v21  ;;  %v638_v25 = vld [vmem:[#allocation4 + $0x8] sm:$0xff]  ;;  %vm431_vm1 = vcmask 7168  }
  0x2b   : > { %327 = vmatpush.bf16.msra.mxu0 %v615_v10  ;;  %648 = vmatpush.bf16.msra.mxu2 %v615_v10  ;;  %s1026_s15 = smov (!%p230_p1, %s832_s15), 1 }
  0x2c   : > { %346 = vmatpush.bf16.msra.mxu1 %v619_v11  ;;  %652 = vmatpush.bf16.msra.mxu3 %v619_v11  ;;  %s635_s19 = sshll.u32 %s1026_s15, 5 }
  0x2d   : > { %s234_s6 = scalar_lea.vmem %s1012_s2, %s635_s19  ;;  %s239_s10 = scalar_lea.vmem %s1013_s3, %s635_s19 }
  0x2f   : > { %328 = vmatpush.bf16.msra.mxu0 %v607_v16  ;;  %649 = vmatpush.bf16.msra.mxu2 %v607_v16 }
  0x30   : > { %347 = vmatpush.bf16.msra.mxu1 %v611_v17  ;;  %653 = vmatpush.bf16.msra.mxu3 %v611_v17 }
  0x33   : > { %329 = vmatpush.bf16.msra.mxu0 %v599_v22  ;;  %650 = vmatpush.bf16.msra.mxu2 %v599_v22 }
  0x34   : > { %348 = vmatpush.bf16.msra.mxu1 %v603_v23  ;;  %654 = vmatpush.bf16.msra.mxu3 %v603_v23 }
  0x36   : > { %628 = vmatmul.msk.bf16.vlgmr.msra.gmra.mxu0 %vm315_vm0, %v637_v24  ;;  %629 = vmatmul.msk.bf16.vlgmr.msra.gmra.mxu2 %vm315_vm0, %v638_v25 }
  0x37   : > { %630 = vmatmul.msk.bf16.vlgmr.msra.gmra.mxu1 %vm315_vm0, %v637_v24  ;;  %631 = vmatmul.msk.bf16.vlgmr.msra.gmra.mxu3 %vm315_vm0, %v638_v25 }
  0xb3   : > { %v331_v26 = vpop.f32.mrf.mxu0 }
  0xb4   : > { %v376_v27 = vmul.f32 %v331_v26, %v331_v26  ;;  %v350_v28 = vpop.f32.mrf.mxu1 }
  0xb5   : > { %v404_v29 = vmul.f32 %v350_v28, %v350_v28  ;;  %v392_v30 = vadd.f32 %v350_v28, %v331_v26 }
  0xb7   : > { %423 = vadd.xlane.f32.xlu0 %v392_v30  ;;  %v408_v31 = vadd.f32 %v404_v29, %v376_v27 }
  0xb9   : > { %440 = vadd.xlane.f32.xlu2 %v408_v31  ;;  %v336_v32 = vpop.f32.mrf.mxu2 }
  0xba   : > { %v355_v33 = vpop.f32.mrf.mxu3  ;;  %v378_v41 = vmul.f32 %v336_v32, %v336_v32 }
  0xbb   : > { %v333_v34 = vpop.f32.mrf.mxu0  ;;  %v394_v35 = vadd.f32 %v355_v33, %v336_v32  ;;  %v406_v42 = vmul.f32 %v355_v33, %v355_v33 }
  0xbc   : > { %v377_v36 = vmul.f32 %v333_v34, %v333_v34  ;;  %v352_v37 = vpop.f32.mrf.mxu1 }
  0xbd   : > { %v393_v38 = vadd.f32 %v352_v37, %v333_v34  ;;  %v405_v39 = vmul.f32 %v352_v37, %v352_v37  ;;  %427 = vadd.xlane.f32.xlu1 %v394_v35  ;;  %v410_v46 = vadd.f32 %v406_v42, %v378_v41 }
  0xbf   : > { %425 = vadd.xlane.f32.xlu0 %v393_v38  ;;  %v409_v40 = vadd.f32 %v405_v39, %v377_v36 }
  0xc1   : > { %442 = vadd.xlane.f32.xlu2 %v409_v40  ;;  %v338_v43 = vpop.f32.mrf.mxu2 }
  0xc2   : > { %v357_v44 = vpop.f32.mrf.mxu3  ;;  %v379_v47 = vmul.f32 %v338_v43, %v338_v43 }
  0xc3   : > { %v395_v45 = vadd.f32 %v357_v44, %v338_v43  ;;  %v407_v48 = vmul.f32 %v357_v44, %v357_v44 }
  0xc5   : > { %429 = vadd.xlane.f32.xlu1 %v395_v45  ;;  %v411_v49 = vadd.f32 %v407_v48, %v379_v47 }
  0xc7   : > { %444 = vadd.xlane.f32.xlu0 %v410_v46 }
  0xcd   : > { %446 = vadd.xlane.f32.xlu1 %v411_v49 }
 0x12a   : > { %v424_v50 = vpop.xlane.xlu0 %423 }
 0x12b   : > { %432 = vst.msk [vmem:[%s234_s6] sm:$0xff] %vm431_vm1, %v424_v50 }
 0x12c   : > { %v441_v51 = vpop.xlane.xlu2 %440 }
 0x12d   : > { %448 = vst.msk [vmem:[%s239_s10] sm:$0xff] %vm431_vm1, %v441_v51 }
 0x130   : > { %v428_v52 = vpop.xlane.xlu1 %427 }
 0x131   : > { %434 = vst.msk [vmem:[%s234_s6 + $0x10] sm:$0xff] %vm431_vm1, %v428_v52 }
 0x132   : > { %v426_v53 = vpop.xlane.xlu0 %425 }
 0x133   : > { %433 = vst.msk [vmem:[%s234_s6 + $0x8] sm:$0xff] %vm431_vm1, %v426_v53 }
 0x134   : > { %v443_v54 = vpop.xlane.xlu2 %442 }
 0x135   : > { %449 = vst.msk [vmem:[%s239_s10 + $0x8] sm:$0xff] %vm431_vm1, %v443_v54 }
 0x138   : > { %v430_v55 = vpop.xlane.xlu1 %429 }
 0x139   : > { %435 = vst.msk [vmem:[%s234_s6 + $0x18] sm:$0xff] %vm431_vm1, %v430_v55 }
 0x13a   : > { %v445_v56 = vpop.xlane.xlu0 %444 }
 0x13b   : > { %450 = vst.msk [vmem:[%s239_s10 + $0x10] sm:$0xff] %vm431_vm1, %v445_v56 }
 0x140   : > { %v447_v57 = vpop.xlane.xlu1 %446 }
 0x141   : > { %451 = vst.msk [vmem:[%s239_s10 + $0x18] sm:$0xff] %vm431_vm1, %v447_v57 }
 0x142 PF: > { %s18_s17 = sadd.s32 1, %s840_s17   ;;  %s1018_s12 = smov %s824_s13 }
 0x143   : > { %p15_p2 = scmp.ge.s32.totalorder %s18_s17, 4   ;;  %s1019_s13 = smov %s828_s14 }
 0x144   : > { %s1020_s14 = smov %s938_s9  ;;  %s1021_s15 = smov %s836_s16 }
 0x145   : > { %s1022_s16 = smov %s1024_s29  ;;  %17 = sbr.rel (!%p15_p2) target bundleno = 5 (0x5), region = 93 }
 0x14a   :  { %489 = vsyncpa [#allocation5], 1 }
 0x14b   :  { %491 = vsyncpa [#allocation5 + $0x1], 1 }
 0x14c   :  { %492 = vsyncpa [#allocation7], 1 }
 0x14d   :  { %494 = vsyncpa [#allocation7 + $0x1], 1 }

</bundles_post_ra>
